<compile_context>
chip_gen: v7x
topology: tpu7x:2x2x1
jax: 0.10.0
libtpu: 0.0.40
codegen_flags: <defaults>
</compile_context>

<pallas_src>
import functools

import jax
import jax.numpy as jnp
from jax import lax
from jax.experimental import pallas as pl
from jax.experimental.pallas import tpu as pltpu


def _dynamic_gcn_kernel(order, n_supports, n_nodes, t_len, x_ref, *refs):
    """Grid = (batch, channel_tile).

    x_ref   : (1, tc, N, T)          activations (stream dtype)
    a_ref_s : (1, tc, N, N*T)        support s, (dst-node, time) merged on lanes
    w_ref   : (S*order, tc, c_out)   1x1-conv weight slice for this channel tile
    b_ref   : (c_out, 1) f32         conv bias
    o_ref   : (1, c_out, N*T)        lane-dense output block (resident over tiles)
    acc_ref : (c_out, N*T) f32       conv accumulator scratch
    """
    a_refs = refs[:n_supports]
    w_ref = refs[n_supports]
    b_ref = refs[n_supports + 1]
    o_ref = refs[n_supports + 2]
    acc_ref = refs[n_supports + 3]

    ci = pl.program_id(1)

    @pl.when(ci == 0)
    def _init():
        # Fold the bias into the accumulator init (saves a full-width add and
        # an extra accumulator read in the finalize step).
        acc_ref[...] = jnp.broadcast_to(
            b_ref[...].astype(jnp.float32), acc_ref.shape)

    # Upcast streamed blocks to f32 once; all math below is f32 (also required
    # on v5e, which has no bf16 VPU).
    x0 = x_ref[0].astype(jnp.float32)                    # (tc, N, T)
    tc = x0.shape[0]

    # First-hop lane replication is support-invariant: hoist out of the loop.
    #   x0_t[i, j, k*T + l] = x0[i, j, l]
    x0_t = jnp.tile(x0, (1, 1, n_nodes))                 # (tc, N, N*T)

    step_acc = None                                      # sum of per-hop conv outputs
    for s in range(n_supports):
        a = a_refs[s][0].astype(jnp.float32)             # (tc, N, N*T)
        xc_t = x0_t
        for r in range(order):
            # dynamic_nconv: hop[i, k*T+l] = sum_j xc[i, j, l] * A[i, j, k, l]
            hop = jnp.sum(xc_t * a, axis=1)              # (tc, N*T), f32
            # 1x1-conv chunk on the MXU (contract the channel tile), f32 acc.
            w_chunk = w_ref[s * order + r].astype(jnp.float32)   # (tc, c_out)
            contrib = lax.dot_general(
                w_chunk, hop,
                dimension_numbers=(((0,), (0,)), ((), ())),
                preferred_element_type=jnp.float32)              # (c_out, N*T)
            step_acc = contrib if step_acc is None else step_acc + contrib
            if r + 1 < order:
                # dst nodes of this hop become the next hop's src nodes; keep
                # the hop chain in f32 to match the f32 reference numerics.
                xc = hop.reshape(tc, n_nodes, t_len)
                xc_t = jnp.tile(xc, (1, 1, n_nodes))     # (tc, N, N*T)

    if step_acc is not None:
        # Single accumulator read-modify-write per grid step.
        acc_ref[...] += step_acc

    @pl.when(ci == pl.num_programs(1) - 1)
    def _finalize():
        # TODO(synk): training-mode dropout (pltpu.prng_seed + prng_random_bits
        # mask with 1/(1-p) scaling) not implemented; inference => identity.
        o_ref[0] = acc_ref[...].astype(o_ref.dtype)


def _vmem_capacity_bytes():
    """Per-core VMEM capacity (generation aware), conservative fallback."""
    try:
        info = pltpu.get_tpu_info()
        cap = getattr(info, "vmem_capacity_bytes", None)
        if cap:
            return int(cap)
    except Exception:
        pass
    return 64 << 20  # v7x per-TensorCore VMEM (smallest of v5e/v6e/v7x)


def _step_footprint_bytes(tile_c, n_supports, order, n_nodes, t_len, nt, c_out,
                          stream_itemsize, w_itemsize, out_itemsize):
    """Per-grid-step VMEM bytes: double-buffered blocks + in-kernel f32 temps."""
    blocks = (2 * stream_itemsize * tile_c * n_nodes * t_len        # x
              + 2 * stream_itemsize * n_supports * tile_c * n_nodes * nt  # A
              + 2 * w_itemsize * n_supports * order * tile_c * c_out      # w
              + 2 * out_itemsize * c_out * nt                             # out
              + 4 * c_out * nt)                                           # f32 acc
    # f32 temporaries: upcast support, tiled x, product, hop, step/contrib.
    temps = 4 * (3 * tile_c * n_nodes * nt + 2 * c_out * nt + 2 * tile_c * nt)
    return blocks + temps


def _choose_tile_c(c_in, n_supports, order, n_nodes, t_len, nt, c_out,
                   stream_itemsize, w_itemsize, out_itemsize, budget_bytes):
    """Largest legal channel tile whose per-step VMEM footprint fits budget."""
    valid = [d for d in range(c_in, 0, -1)
             if c_in % d == 0 and (d == c_in or d % 8 == 0)]
    for d in valid:
        if _step_footprint_bytes(d, n_supports, order, n_nodes, t_len, nt,
                                 c_out, stream_itemsize, w_itemsize,
                                 out_itemsize) <= budget_bytes:
            return d
    return valid[-1]


def dynamic_gcn_forward(x, supports, w, b, *, order=2, tile_c=None,
                        stream_dtype=None, vmem_budget_bytes=None):
    """x: (B, c_in, N, T); supports: list of (B, c_in, N, N, T);
    w: (c_out, order*len(supports)*c_in); b: (c_out,).

    `stream_dtype` (e.g. jnp.bfloat16) only changes how x / supports are
    streamed from HBM; all in-kernel math and the output dtype stay f32-exact
    w.r.t. the (rounded) inputs.
    """
    B, c_in, N, T = x.shape
    S = len(supports)
    c_tot = order * S * c_in
    c_out = w.shape[0]
    assert w.shape == (c_out, c_tot)
    for a in supports:
        assert a.shape == (B, c_in, N, N, T)

    out_dtype = x.dtype
    if stream_dtype is not None:
        x = x.astype(stream_dtype)
        supports = [a.astype(stream_dtype) for a in supports]

    nt = N * T
    stream_itemsize = jnp.dtype(x.dtype).itemsize
    w_itemsize = jnp.dtype(w.dtype).itemsize
    out_itemsize = jnp.dtype(out_dtype).itemsize

    # Generation-aware VMEM budget (128 MiB v5e/v6e, 64 MiB v7x), minus
    # headroom for compiler-internal scratch.
    vmem_cap = _vmem_capacity_bytes()
    reserve = 8 << 20
    usable = max(vmem_cap - reserve, 16 << 20)
    if vmem_budget_bytes is None:
        vmem_budget_bytes = int(usable * 0.9)

    if tile_c is None:
        tile_c = _choose_tile_c(c_in, S, order, N, T, nt, c_out,
                                stream_itemsize, w_itemsize, out_itemsize,
                                vmem_budget_bytes)
    assert c_in % tile_c == 0 and (tile_c == c_in or tile_c % 8 == 0)
    n_ct = c_in // tile_c

    # Free reshapes (merge adjacent trailing dims) -> lane-dense layouts.
    a_flat = [a.reshape(B, c_in, N, nt) for a in supports]
    # Weight (c_out, S*order*c_in) -> (S*order, c_in, c_out): channel tile is a
    # legal second-to-last block dim; kernel contracts dim 0 of each chunk.
    w_r = jnp.transpose(w.reshape(c_out, S * order, c_in), (1, 2, 0))
    b_r = b.reshape(c_out, 1).astype(jnp.float32)

    kernel = functools.partial(_dynamic_gcn_kernel, order, S, N, T)

    in_specs = [pl.BlockSpec((1, tile_c, N, T), lambda bi, ci: (bi, ci, 0, 0))]
    in_specs += [pl.BlockSpec((1, tile_c, N, nt), lambda bi, ci: (bi, ci, 0, 0))
                 for _ in range(S)]
    in_specs += [
        pl.BlockSpec((S * order, tile_c, c_out), lambda bi, ci: (0, ci, 0)),
        pl.BlockSpec((c_out, 1), lambda bi, ci: (0, 0)),
    ]
    out_specs = pl.BlockSpec((1, c_out, nt), lambda bi, ci: (bi, 0, 0))

    # vmem_limit is consistent with the tile chooser: never below the actual
    # footprint, never above the physical per-core capacity.
    need = _step_footprint_bytes(tile_c, S, order, N, T, nt, c_out,
                                 stream_itemsize, w_itemsize, out_itemsize)
    vmem_limit = int(min(max(need + (4 << 20), 16 << 20), vmem_cap))

    nconv_flops = 2 * B * S * order * c_in * N * N * T
    conv_flops = 2 * B * c_out * c_tot * N * T
    bytes_accessed = (stream_itemsize * (x.size + sum(a.size for a in supports))
                      + w_itemsize * (w.size + b.size)
                      + out_itemsize * B * c_out * nt)
    cost = pl.CostEstimate(flops=int(nconv_flops + conv_flops),
                           transcendentals=0,
                           bytes_accessed=int(bytes_accessed))

    out_flat = pl.pallas_call(
        kernel,
        out_shape=jax.ShapeDtypeStruct((B, c_out, nt), out_dtype),
        grid=(B, n_ct),
        in_specs=in_specs,
        out_specs=out_specs,
        scratch_shapes=[pltpu.VMEM((c_out, nt), jnp.float32)],
        compiler_params=pltpu.CompilerParams(
            dimension_semantics=("parallel", "arbitrary"),
            vmem_limit_bytes=vmem_limit),
        cost_estimate=cost,
    )(x, *a_flat, w_r, b_r)

    return out_flat.reshape(B, c_out, N, T)


def _reference(x, supports, w, b, order=2):
    outs = []
    for a in supports:
        x1 = jnp.einsum("bijl,bijkl->bikl", x, a)
        outs.append(x1)
        for _ in range(2, order + 1):
            x2 = jnp.einsum("bijl,bijkl->bikl", x1, a)
            outs.append(x2)
            x1 = x2
    h = jnp.concatenate(outs, axis=1)
    return jnp.einsum("oc,bckl->bokl", w, h) + b[None, :, None, None]


if __name__ == "__main__":
    # Small shapes consistent with the module's forward (N*T = 128 fills a
    # full, 128-aligned lane row).
    B, c_in, N, T = 2, 4, 8, 16
    c_out, order, supports_len = 8, 2, 1
    dropout_p = 0.3  # identity at inference

    key = jax.random.PRNGKey(0)
    kx, ka, kw, kb = jax.random.split(key, 4)
    x = jax.random.normal(kx, (B, c_in, N, T), jnp.float32)
    # Row-stochastic dynamic adjacency (normalized over the source-node axis).
    A = jax.nn.softmax(jax.random.normal(ka, (B, c_in, N, N, T), jnp.float32),
                       axis=2)

    c_tot = order * supports_len * c_in
    w = jax.random.normal(kw, (c_out, c_tot), jnp.float32) * 0.1
    b = jax.random.normal(kb, (c_out,), jnp.float32) * 0.1

    # 1) f32-streaming path: exact against the f32 reference.
    out = dynamic_gcn_forward(x, [A], w, b, order=order)
    out = jax.block_until_ready(out)
    ref = _reference(x, [A], w, b, order=order)
    assert out.shape == (B, c_out, N, T)
    assert jnp.allclose(out, ref, atol=1e-4, rtol=1e-4), \
        float(jnp.max(jnp.abs(out - ref)))

    # 2) bf16-streaming path (halves HBM traffic on the dominant support
    #    stream); compare against the reference on bf16-rounded inputs (the
    #    kernel itself still computes in f32).
    out_bf16 = dynamic_gcn_forward(x, [A], w, b, order=order,
                                   stream_dtype=jnp.bfloat16)
    out_bf16 = jax.block_until_ready(out_bf16)
    x_r = x.astype(jnp.bfloat16).astype(jnp.float32)
    A_r = A.astype(jnp.bfloat16).astype(jnp.float32)
    ref_bf16 = _reference(x_r, [A_r], w, b, order=order)
    assert out_bf16.shape == (B, c_out, N, T)
    assert jnp.allclose(out_bf16, ref_bf16, atol=2e-3, rtol=2e-3), \
        float(jnp.max(jnp.abs(out_bf16 - ref_bf16)))

    print("KERNEL_OK")
</pallas_src>

<mosaic_0001>
module attributes {stable_mosaic.version = 11 : i64} {
  func.func @_dynamic_gcn_kernel(%arg0: i32, %arg1: i32, %arg2: memref<1x4x8x16xf32, #tpu.memory_space<vmem>>, %arg3: memref<1x4x8x128xf32, #tpu.memory_space<vmem>>, %arg4: memref<2x4x8xf32, #tpu.memory_space<vmem>>, %arg5: memref<8x1xf32, #tpu.memory_space<vmem>>, %arg6: memref<1x8x128xf32, #tpu.memory_space<vmem>>, %arg7: memref<8x128xf32, #tpu.memory_space<vmem>>) attributes {dimension_semantics = [#tpu.dimension_semantics<parallel>, #tpu.dimension_semantics<arbitrary>], iteration_bounds = array<i64: 2, 1>, scalar_prefetch = 0 : i64, scratch_operands = 1 : i64, tpu.core_type = #tpu.core_type<tc>, window_params = [{transform_indices = @transform_0, window_bounds = array<i64: 1, 4, 8, 16>}, {transform_indices = @transform_1, window_bounds = array<i64: 1, 4, 8, 128>}, {transform_indices = @transform_2, window_bounds = array<i64: 2, 4, 8>}, {pipeline_mode = #tpu.pipeline_mode<synchronous>, transform_indices = @transform_3, window_bounds = array<i64: 8, 1>}, {transform_indices = @transform_4, window_bounds = array<i64: 1, 8, 128>}]} {
    %c0_i32 = arith.constant 0 : i32
    %0 = arith.cmpi eq, %arg1, %c0_i32 : i32
    %1 = arith.extui %0 : i1 to i32
    %c0_i32_0 = arith.constant 0 : i32
    %2 = arith.cmpi ne, %1, %c0_i32_0 : i32
    scf.if %2 {
      %c0_22 = arith.constant 0 : index
      %c0_23 = arith.constant 0 : index
      %27 = vector.load %arg5[%c0_22, %c0_23] : memref<8x1xf32, #tpu.memory_space<vmem>>, vector<8x1xf32>
      %28 = vector.shape_cast %27 : vector<8x1xf32> to vector<8x1xf32>
      %29 = vector.broadcast %28 : vector<8x1xf32> to vector<8x128xf32>
      %c0_24 = arith.constant 0 : index
      %c0_25 = arith.constant 0 : index
      %30 = vector.load %arg7[%c0_24, %c0_25] : memref<8x128xf32, #tpu.memory_space<vmem>>, vector<8x128xf32>
      tpu.vector_store %arg7[%c0_24, %c0_25], %29 {strides = array<i32>} : memref<8x128xf32, #tpu.memory_space<vmem>>, vector<8x128xf32>,
    } else {
    }
    %c0 = arith.constant 0 : index
    %c0_1 = arith.constant 0 : index
    %c0_2 = arith.constant 0 : index
    %c0_3 = arith.constant 0 : index
    %3 = vector.load %arg2[%c0, %c0_1, %c0_2, %c0_3] : memref<1x4x8x16xf32, #tpu.memory_space<vmem>>, vector<1x4x8x16xf32>
    %4 = vector.shape_cast %3 : vector<1x4x8x16xf32> to vector<4x8x16xf32>
    %5 = tpu.concatenate %4, %4, %4, %4, %4, %4, %4, %4 in 2 : vector<4x8x16xf32>, vector<4x8x16xf32>, vector<4x8x16xf32>, vector<4x8x16xf32>, vector<4x8x16xf32>, vector<4x8x16xf32>, vector<4x8x16xf32>, vector<4x8x16xf32> -> vector<4x8x128xf32>
    %c0_4 = arith.constant 0 : index
    %c0_5 = arith.constant 0 : index
    %c0_6 = arith.constant 0 : index
    %c0_7 = arith.constant 0 : index
    %6 = vector.load %arg3[%c0_4, %c0_5, %c0_6, %c0_7] : memref<1x4x8x128xf32, #tpu.memory_space<vmem>>, vector<1x4x8x128xf32>
    %7 = vector.shape_cast %6 : vector<1x4x8x128xf32> to vector<4x8x128xf32>
    %8 = arith.mulf %5, %7 : vector<4x8x128xf32>
    %cst = arith.constant dense<0.000000e+00> : vector<4x128xf32>
    %9 = vector.multi_reduction <add>, %8, %cst [1] : vector<4x8x128xf32> to vector<4x128xf32>
    %c0_8 = arith.constant 0 : index
    %c0_9 = arith.constant 0 : index
    %c0_10 = arith.constant 0 : index
    %10 = vector.load %arg4[%c0_8, %c0_9, %c0_10] : memref<2x4x8xf32, #tpu.memory_space<vmem>>, vector<1x4x8xf32>
    %11 = vector.shape_cast %10 : vector<1x4x8xf32> to vector<4x8xf32>
    %cst_11 = arith.constant dense<0.000000e+00> : vector<8x128xf32>
    %12 = tpu.matmul %11, %9, %cst_11 {dimension_numbers = #tpu.dot_dimension_numbers<[0], [0], [1], [1], [0, 1, 1, 1], [], []>} : vector<4x8xf32>, vector<4x128xf32>, vector<8x128xf32> -> vector<8x128xf32>
    %13 = vector.shape_cast %9 : vector<4x128xf32> to vector<4x8x16xf32>
    %14 = tpu.concatenate %13, %13, %13, %13, %13, %13, %13, %13 in 2 : vector<4x8x16xf32>, vector<4x8x16xf32>, vector<4x8x16xf32>, vector<4x8x16xf32>, vector<4x8x16xf32>, vector<4x8x16xf32>, vector<4x8x16xf32>, vector<4x8x16xf32> -> vector<4x8x128xf32>
    %15 = arith.mulf %14, %7 : vector<4x8x128xf32>
    %cst_12 = arith.constant dense<0.000000e+00> : vector<4x128xf32>
    %16 = vector.multi_reduction <add>, %15, %cst_12 [1] : vector<4x8x128xf32> to vector<4x128xf32>
    %c1 = arith.constant 1 : index
    %c0_13 = arith.constant 0 : index
    %c0_14 = arith.constant 0 : index
    %17 = vector.load %arg4[%c1, %c0_13, %c0_14] : memref<2x4x8xf32, #tpu.memory_space<vmem>>, vector<1x4x8xf32>
    %18 = vector.shape_cast %17 : vector<1x4x8xf32> to vector<4x8xf32>
    %cst_15 = arith.constant dense<0.000000e+00> : vector<8x128xf32>
    %19 = tpu.matmul %18, %16, %cst_15 {dimension_numbers = #tpu.dot_dimension_numbers<[0], [0], [1], [1], [0, 1, 1, 1], [], []>} : vector<4x8xf32>, vector<4x128xf32>, vector<8x128xf32> -> vector<8x128xf32>
    %20 = arith.addf %12, %19 : vector<8x128xf32>
    %c0_16 = arith.constant 0 : index
    %c0_17 = arith.constant 0 : index
    %21 = vector.load %arg7[%c0_16, %c0_17] : memref<8x128xf32, #tpu.memory_space<vmem>>, vector<8x128xf32>
    %22 = arith.addf %21, %20 : vector<8x128xf32>
    %c0_18 = arith.constant 0 : index
    %c0_19 = arith.constant 0 : index
    %23 = vector.load %arg7[%c0_18, %c0_19] : memref<8x128xf32, #tpu.memory_space<vmem>>, vector<8x128xf32>
    tpu.vector_store %arg7[%c0_18, %c0_19], %22 {strides = array<i32>} : memref<8x128xf32, #tpu.memory_space<vmem>>, vector<8x128xf32>,
    %c0_i32_20 = arith.constant 0 : i32
    %24 = arith.cmpi eq, %arg1, %c0_i32_20 : i32
    %25 = arith.extui %24 : i1 to i32
    %c0_i32_21 = arith.constant 0 : i32
    %26 = arith.cmpi ne, %25, %c0_i32_21 : i32
    scf.if %26 {
      %c0_22 = arith.constant 0 : index
      %c0_23 = arith.constant 0 : index
      %27 = vector.load %arg7[%c0_22, %c0_23] : memref<8x128xf32, #tpu.memory_space<vmem>>, vector<8x128xf32>
      %c0_24 = arith.constant 0 : index
      %c0_25 = arith.constant 0 : index
      %c0_26 = arith.constant 0 : index
      %28 = vector.load %arg6[%c0_24, %c0_25, %c0_26] : memref<1x8x128xf32, #tpu.memory_space<vmem>>, vector<1x8x128xf32>
      %29 = vector.shape_cast %28 : vector<1x8x128xf32> to vector<8x128xf32>
      %30 = vector.shape_cast %27 : vector<8x128xf32> to vector<1x8x128xf32>
      tpu.vector_store %arg6[%c0_24, %c0_25, %c0_26], %30 {strides = array<i32>} : memref<1x8x128xf32, #tpu.memory_space<vmem>>, vector<1x8x128xf32>,
    } else {
    }
    return
  }
  func.func @transform_0(%arg0: i32, %arg1: i32) -> (i32, i32, i32, i32) {
    %c0_i32 = arith.constant 0 : i32
    %c0_i32_0 = arith.constant 0 : i32
    %c0_i32_1 = arith.constant 0 : i32
    return %arg0, %arg1, %c0_i32, %c0_i32_0 : i32, i32, i32, i32
  }
  func.func @transform_1(%arg0: i32, %arg1: i32) -> (i32, i32, i32, i32) {
    %c0_i32 = arith.constant 0 : i32
    %c0_i32_0 = arith.constant 0 : i32
    %c0_i32_1 = arith.constant 0 : i32
    return %arg0, %arg1, %c0_i32, %c0_i32_0 : i32, i32, i32, i32
  }
  func.func @transform_2(%arg0: i32, %arg1: i32) -> (i32, i32, i32) {
    %c0_i32 = arith.constant 0 : i32
    %c0_i32_0 = arith.constant 0 : i32
    %c0_i32_1 = arith.constant 0 : i32
    return %c0_i32, %arg1, %c0_i32_0 : i32, i32, i32
  }
  func.func @transform_3(%arg0: i32, %arg1: i32) -> (i32, i32) {
    %c0_i32 = arith.constant 0 : i32
    %c0_i32_0 = arith.constant 0 : i32
    %c0_i32_1 = arith.constant 0 : i32
    return %c0_i32, %c0_i32_0 : i32, i32
  }
  func.func @transform_4(%arg0: i32, %arg1: i32) -> (i32, i32, i32) {
    %c0_i32 = arith.constant 0 : i32
    %c0_i32_0 = arith.constant 0 : i32
    %c0_i32_1 = arith.constant 0 : i32
    return %arg0, %c0_i32, %c0_i32_0 : i32, i32, i32
  }
}

</mosaic_0001>

<bundles_post_ra>
// kernel: tpu_custom_call.1
= control target key start
LH: loop header
LB: loop body
LE: loop exit
PB: predicated region body
PF: predicated region fallthrough
CT: control target
= control target key end

     0   :  { %9 = vsyncpa [#allocation4], 0  ;;  %s2012_s0 = inlined_call_operand.hbm [shape: f32[2,4,8,16], index: 0, kind: input, shape index: {}]   ;;  %s2013_s1 = inlined_call_operand.hbm [shape: f32[2,4,8,128], index: 1, kind: input, shape index: {}]   ;;  %s2014_s2 = inlined_call_operand.vmem [shape: f32[2,4,8], index: 2, kind: input, shape index: {}]   ;;  %s2015_s3 = inlined_call_operand.vmem [shape: f32[8,1], index: 3, kind: input, shape index: {}]   ;;  %s2016_s4 = inlined_call_operand.hbm [shape: f32[2,8,128], index: 4, kind: output, shape index: {}]  }
   0x1   :  { %11 = vsyncpa [#allocation4 + $0x1], 0 }
   0x2   :  { %12 = vsyncpa [#allocation7], 0 }
   0x3   :  { %14 = vsyncpa [#allocation7 + $0x1], 0 }
   0x4   :  { %15 = vsyncpa [#allocation5], 0 }
   0x5   :  { %17 = vsyncpa [#allocation5 + $0x1], 0  ;;  %s1481_s15 = smov 0   ;;  %s1483_s16 = smov 0  }
   0x6   :  { %s1485_s17 = smov 0   ;;  %s1487_s18 = smov 0  }
   0x7   :  { %s1489_s19 = smov 0   ;;  %s1491_s20 = smov 0  }
   0x8 LB: > { %s1169_s21 = sadd.s32 4294967295, %s1437_s20   ;;  %s1170_s22 = sadd.s32 4294967294, %s1437_s20   ;;  %s1437_s20 = sphi %s1491_s20, %s23_s20   ;;  %s1433_s19 = sphi %s1489_s19, %s2036_s19   ;;  %s1429_s18 = sphi %s1487_s18, %s2035_s18   ;;  %s1425_s17 = sphi %s1485_s17, %s2034_s17   ;;  %s1421_s16 = sphi %s1483_s16, %s2033_s16   ;;  %s1417_s15 = sphi %s1481_s15, %s2032_s15  }
   0x9   : > { %s35_s23 = sadd.s32 1, %s1433_s19  ;;  %s44_s24 = sadd.s32 1, %s1425_s17 }
   0xa   : > { %p37_p0 = scmp.ge.s32.totalorder %s35_s23, 2  ;;  %p51_p1 = scmp.ne.s32.totalorder %s1425_s17, %s1421_s16 }
   0xb   : > { %p52_p2 = scmp.eq.s32.totalorder %s1437_s20, 0  ;;  %p57_p3 = scmp.ne.s32.totalorder %s1421_s16, %s1417_s15 }
   0xc   : > { %s2038_s23 = smov (%p37_p0, %s35_s23), 0  ;;  %p58_p5 = scmp.eq.s32.totalorder %s1169_s21, 0 }
   0xd   : > { %p1522_p4 = por %p52_p2, %p51_p1  ;;  %s39_s26 = ssub.s32 %s1433_s19, %s2038_s23 }
   0xe   : > { %p156_p6 = scmp.eq.s32.totalorder %s1169_s21, 1  ;;  %p42_p7 = scmp.eq.s32.totalorder %s39_s26, 0 }
   0xf   : > { %p1528_p8 = por %p58_p5, %p57_p3  ;;  %p162_p10 = scmp.eq.s32.totalorder %s1170_s22, 1 }
  0x10   : > { %p1532_p9 = por %p156_p6, %p51_p1  ;;  %p1226_p13 = scmp.lt.s32.totalorder %s1437_s20, 2 }
  0x11   : > { %s2021_s27 = scalar_select %p1528_p8, 1, 0 }
  0x12   : > { %s2022_s28 = scalar_select %p1532_p9, 1, 0 }
  0x13   : > { %s1537_s29 = scalar_select %p42_p7, %s1425_s17, %s44_s24  }
  0x14   : > { %p1539_p11 = por %p162_p10, %p57_p3  ;;  %s1546_s5 = sand.u32 1, %s1425_s17  }
  0x15   : > { %s1174_s6 = sshll.u32 %s1546_s5, 5  ;;  %s1193_s7 = sshll.u32 %s1433_s19, 9 }
  0x16   : > { %s2023_s30 = scalar_select %p1539_p11, 1, 0 }
  0x17   : > { %s1555_s10 = scalar_lea.hbm %s2012_s0, %s1193_s7  ;;  %s196_s11 = scalar_lea.vmem [#allocation3], %s1174_s6 }
  0x18   : > { %s205_s12 = sshll.u32 %s196_s11, 4  ;;  %p1563_p0 = pnand %p1226_p13, %p1522_p4  ;;  %s1559_s12 = int_to_ptr.vmem [resolvable:$true] %s205_s12 }
  0x19   : > { %s193_s14 = scalar_lea.sflag [#allocation4], %s1546_s5  ;;  %s1291_s21 = scalar_lea.hbm %s1555_s10, 512 }
  0x1a   : > { %p1292_p2 = scmp.ne.s32.totalorder %s1555_s10, %s1291_s21  ;;  %p1293_p3 = pneg %p1563_p0 }
  0x1b   : > { %s1296_s25 = scalar_lea.hbm %s2012_s0, 1024  ;;  %p1297_p4 = scmp.lt.u32.totalorder %s1555_s10, %s2012_s0 }
  0x1c   : > { %p1294_p5 = pnand %p1293_p3, %p1292_p2  ;;  %p1298_p7 = scmp.lt.u32.totalorder %s1296_s25, %s1291_s21 }
  0x1d   : > { %p1300_p13 = scmp.lt.u32.totalorder %s1291_s21, %s1555_s10 }
  0x1e   : > { %p1295_p6 = pneg %p1294_p5  ;;  %p1299_p10 = por %p1298_p7, %p1297_p4 }
  0x20   : > { %p1301_p12 = por %p1300_p13, %p1299_p10 }
  0x22   : > { %p1302_p1 = pnand %p1301_p12, %p1295_p6 }
  0x24   : > { %1305 = shalt.err (!%p1302_p1)
}
  0x25   : > { %s1306_s9 = scalar_lea.vmem %s1559_s12, 512  ;;  %s1439_s11 = smov [#allocation3]  }
  0x26   : > { %p1307_p2 = scmp.ne.s32.totalorder %s1559_s12, %s1306_s9  ;;  %s1311_s22 = sshll.u32 %s1439_s11, 4  ;;  %s1312_s22 = int_to_ptr.vmem [resolvable:$false] %s1311_s22 }
  0x27   : > { %s1313_s24 = scalar_lea.vmem %s1312_s22, 1024  ;;  %p1314_p9 = scmp.lt.s32.totalorder %s1559_s12, %s1312_s22 }
  0x28   : > { %p1309_p5 = pnand %p1307_p2, %p1293_p3  ;;  %p1315_p4 = scmp.lt.s32.totalorder %s1313_s24, %s1306_s9 }
  0x2a   : > { %p1310_p11 = pneg %p1309_p5  ;;  %p1316_p7 = por %p1315_p4, %p1314_p9 }
  0x2c   : > { %p1317_p10 = pnand %p1316_p7, %p1310_p11 }
  0x2e   : > { %1320 = shalt.err (!%p1317_p10)
}
  0x2f   : > { %s2018_s21 = smov 128   ;;  %s1441_s25 = smov 8  }
  0x30   : > { %1218 = dma.hbm_to_vmem [thread:$0]  (!%p1563_p0), %s1555_s10, 512, %s1559_s12, %s193_s14, %s2018_s21, %s2018_s21, %s1441_s25  }
  0x31   : > { %p236_p9 = scmp.lt.s32.totalorder %s1437_s20, 3  ;;  %s1605_s9 = scalar_lea.hbm %s2013_s1, %s1193_s7 }
  0x32   : > { %p2025_p11 = scmp.ge.s32.totalorder %s1437_s20, 1  ;;  %s219_s22 = scalar_lea.vmem [#allocation6], %s1174_s6 }
  0x33   : > { %s228_s24 = sshll.u32 %s219_s22, 4  ;;  %s216_s10 = scalar_lea.sflag [#allocation7], %s1546_s5  ;;  %s1615_s24 = int_to_ptr.vmem [resolvable:$true] %s228_s24 }
  0x34   : > { %p1609_p12 = pnand %p2025_p11, %p236_p9  ;;  %s1321_s12 = scalar_lea.hbm %s1605_s9, 512 }
  0x35   : > { %p1322_p1 = scmp.ne.s32.totalorder %s1605_s9, %s1321_s12  ;;  %s1326_s26 = scalar_lea.hbm %s2013_s1, 1024 }
  0x36   : > { %p1327_p2 = scmp.lt.u32.totalorder %s1605_s9, %s2013_s1  ;;  %p1328_p5 = scmp.lt.u32.totalorder %s1326_s26, %s1321_s12 }
  0x37   : > { %p1324_p6 = pnand %p1322_p1, %p1293_p3  ;;  %p1330_p7 = scmp.lt.u32.totalorder %s1321_s12, %s1605_s9 }
  0x38   : > { %p1329_p4 = por %p1328_p5, %p1327_p2 }
  0x39   : > { %p1325_p13 = pneg %p1324_p6 }
  0x3a   : > { %p1331_p10 = por %p1330_p7, %p1329_p4 }
  0x3c   : > { %p1332_p9 = pnand %p1331_p10, %p1325_p13 }
  0x3e   : > { %1335 = shalt.err (!%p1332_p9)
}
  0x3f   : > { %s1336_s6 = scalar_lea.vmem %s1615_s24, 512  ;;  %s1442_s22 = smov [#allocation6]  }
  0x40   : > { %p1337_p11 = scmp.ne.s32.totalorder %s1615_s24, %s1336_s6  ;;  %s1341_s7 = sshll.u32 %s1442_s22, 4  ;;  %s1342_s7 = int_to_ptr.vmem [resolvable:$false] %s1341_s7 }
  0x41   : > { %s1343_s21 = scalar_lea.vmem %s1342_s7, 1024  ;;  %p1344_p8 = scmp.lt.s32.totalorder %s1615_s24, %s1342_s7 }
  0x42   : > { %p1339_p1 = pnand %p1337_p11, %p1293_p3  ;;  %p1345_p2 = scmp.lt.s32.totalorder %s1343_s21, %s1336_s6 }
  0x44   : > { %p1340_p6 = pneg %p1339_p1  ;;  %p1346_p5 = por %p1345_p2, %p1344_p8 }
  0x46   : > { %p1347_p4 = pnand %p1346_p5, %p1340_p6 }
  0x48   : > { %1350 = shalt.err (!%p1347_p4)
}
  0x49   : > { %s2027_s12 = smov 128   ;;  %240 = sbr.rel (%p1609_p12) target bundleno = 890 (0x37a), region = 36 }
  0x4a   : > { %1221 = dma.hbm_to_vmem [thread:$0]  (!%p1563_p0), %s1605_s9, 512, %s1615_s24, %s216_s10, %s2027_s12, %s2027_s12, %s1441_s25  }
  0x4b   : > { %s1649_s14 = sand.u32 (!%p1609_p12), 1, %s1421_s16   ;;  %p2028_p8 = scmp.ne.s32.totalorder (!%p1609_p12), %s2021_s27, 0 }
  0x4c   : > { %s1181_s26 = sshll.u32 (!%p1609_p12), %s1649_s14, 5  ;;  %s243_s8 = scalar_lea.sflag (!%p1609_p12), [#allocation4], %s1649_s14 }
  0x4d   : > { %s246_s13 = scalar_lea.vmem (!%p1609_p12), [#allocation3], %s1181_s26 }
  0x50   : > { %1404 = dma.done.wait (%p2028_p8), %s243_s8, 512  }
  0x51   : > { %1406 = vsyncadd (%p2028_p8), %s243_s8, 4294966784  ;;  %s252_s5 = scalar_lea.sflag [#allocation7], %s1649_s14  ;;  %s1658_s25 = scalar_lea.vmem [#allocation6], %s1181_s26 }
  0x52   : > { %1408 = dma.done.wait (%p2028_p8), %s252_s5, 512  }
  0x53   : > { %1410 = vsyncadd (%p2028_p8), %s252_s5, 4294966784  ;;  %v1664_v0 = vld [vmem:[%s246_s13 + $0x8] sm:$0xff]  ;;  %s1443_s9 = smov 32   ;;  %s1444_s11 = smov 16   ;;  %v1670_v1 = vld [vmem:[%s246_s13 + $0x10] sm:$0xff]  ;;  %v1450_v4 = vmov 0.0  }
  0x54   : > { %328 = vrot.lane.b32.xlu1 %v1664_v0, %s1443_s9  ;;  %316 = vrot.lane.b32.xlu0 %v1664_v0, %s1444_s11  ;;  %v1672_v2 = vld [vmem:[%s246_s13] sm:$0xff]  ;;  %v1678_v3 = vld [vmem:[%s246_s13 + $0x18] sm:$0xff]  ;;  %s1445_s27 = smov 48   ;;  %s1446_s24 = smov 64   ;;  %vm398_vm0 = vcmask 130048   ;;  %vm403_vm1 = vcmask 261120  }
  0x55   : > { %s1447_s10 = smov 80   ;;  %s1448_s6 = smov 96   ;;  %1204 = vmatprep.subr.mxu1 %v1450_v4  ;;  %1199 = vmatprep.subr.mxu0 %v1450_v4  ;;  %vm408_vm2 = vcmask 392192   ;;  %vm413_vm3 = vcmask 523264   ;;  %vm418_vm4 = vcmask 654336   ;;  %vm423_vm5 = vcmask 785408  }
  0x56   : > { %s1449_s22 = smov 112   ;;  %vm428_vm6 = vcmask 916480   ;;  %v1739_v33 = vld [vmem:[%s1658_s25 + $0x8] sm:$0xff]  ;;  %v1753_v45 = vld [vmem:[%s1658_s25 + $0x10] sm:$0xff]  ;;  %v1767_v61 = vld [vmem:[%s1658_s25] sm:$0xff]  ;;  %vm527_vm7 = vcmask 1041409  }
  0x57   : > { %v1770_v62 = vld [vmem:[%s1658_s25 + $0x18] sm:$0xff]  ;;  %vm530_vm8 = vcmask 1042434   ;;  %vm533_vm9 = vcmask 1043459   ;;  %vm842_vm10 = vcmask 1043456   ;;  %vm1453_vm11 = vmmov 0   ;;  %s1183_s5 = sshll.u32 %s1649_s14, 3 }
  0x58   : > { %318 = vrot.lane.b32.xlu0 %v1670_v1, %s1444_s11  ;;  %314 = vrot.lane.b32.xlu1 %v1672_v2, %s1444_s11  ;;  %vm838_vm12 = vcmask 31744   ;;  %s1190_s25 = sshll.u32 %s1429_s18, 7  ;;  %p2029_p3 = scmp.ne.s32.totalorder %s2022_s28, 0 }
  0x59   : > { %1201 = vmatprep.mubr.msk.f32.mxu0 %vm1453_vm11, %v1450_v4  ;;  %1206 = vmatprep.mubr.msk.f32.mxu1 %vm1453_vm11, %v1450_v4  ;;  %s1455_s18 = smov [#allocation8]  }
  0x5a   : > { %s1355_s7 = sshll.u32 %s1455_s18, 4  ;;  %s1356_s7 = int_to_ptr.vmem [resolvable:$false] %s1355_s7 }
  0x5b   : > { %s1357_s21 = scalar_lea.vmem %s1356_s7, 256 }
  0x5c   : > { %320 = vrot.lane.b32.xlu0 %v1678_v3, %s1444_s11  ;;  %330 = vrot.lane.b32.xlu1 %v1670_v1, %s1443_s9 }
  0x60   : > { %340 = vrot.lane.b32.xlu0 %v1664_v0, %s1445_s27  ;;  %326 = vrot.lane.b32.xlu1 %v1672_v2, %s1443_s9 }
  0x64   : > { %332 = vrot.lane.b32.xlu0 %v1678_v3, %s1443_s9  ;;  %342 = vrot.lane.b32.xlu1 %v1670_v1, %s1445_s27 }
  0x68   : > { %352 = vrot.lane.b32.xlu0 %v1664_v0, %s1446_s24  ;;  %338 = vrot.lane.b32.xlu1 %v1672_v2, %s1445_s27 }
  0x6c   : > { %344 = vrot.lane.b32.xlu0 %v1678_v3, %s1445_s27  ;;  %354 = vrot.lane.b32.xlu1 %v1670_v1, %s1446_s24 }
  0x70   : > { %364 = vrot.lane.b32.xlu0 %v1664_v0, %s1447_s10  ;;  %350 = vrot.lane.b32.xlu1 %v1672_v2, %s1446_s24 }
  0x74   : > { %356 = vrot.lane.b32.xlu0 %v1678_v3, %s1446_s24  ;;  %366 = vrot.lane.b32.xlu1 %v1670_v1, %s1447_s10 }
  0x78   : > { %376 = vrot.lane.b32.xlu0 %v1664_v0, %s1448_s6  ;;  %362 = vrot.lane.b32.xlu1 %v1672_v2, %s1447_s10 }
  0x7c   : > { %368 = vrot.lane.b32.xlu0 %v1678_v3, %s1447_s10  ;;  %378 = vrot.lane.b32.xlu1 %v1670_v1, %s1448_s6 }
  0x80   : > { %388 = vrot.lane.b32.xlu0 %v1664_v0, %s1449_s22  ;;  %374 = vrot.lane.b32.xlu1 %v1672_v2, %s1448_s6 }
  0x84   : > { %380 = vrot.lane.b32.xlu0 %v1678_v3, %s1448_s6  ;;  %390 = vrot.lane.b32.xlu1 %v1670_v1, %s1449_s22 }
  0x88   : > { %386 = vrot.lane.b32.xlu0 %v1672_v2, %s1449_s22  ;;  %392 = vrot.lane.b32.xlu1 %v1678_v3, %s1449_s22 }
  0xc6   : > { %v329_v5 = vpop.permute.xlu1 %328  ;;  %v317_v6 = vpop.permute.xlu0 %316 }
  0xc7   : > { %v400_v25 = vsel %vm398_vm0, %v1664_v0, %v317_v6 }
  0xc8   : > { %v405_v26 = vsel %vm403_vm1, %v400_v25, %v329_v5 }
  0xca   : > { %v319_v7 = vpop.permute.xlu0 %318  ;;  %v315_v8 = vpop.permute.xlu1 %314 }
  0xcb   : > { %v401_v31 = vsel %vm398_vm0, %v1670_v1, %v319_v7  ;;  %v399_v38 = vsel %vm398_vm0, %v1672_v2, %v315_v8 }
  0xce   : > { %v321_v9 = vpop.permute.xlu0 %320  ;;  %v331_v10 = vpop.permute.xlu1 %330 }
  0xcf   : > { %v406_v34 = vsel %vm403_vm1, %v401_v31, %v331_v10  ;;  %v402_v43 = vsel %vm398_vm0, %v1678_v3, %v321_v9 }
  0xd2   : > { %v341_v11 = vpop.permute.xlu0 %340  ;;  %v327_v12 = vpop.permute.xlu1 %326 }
  0xd3   : > { %v410_v29 = vsel %vm408_vm2, %v405_v26, %v341_v11  ;;  %v404_v46 = vsel %vm403_vm1, %v399_v38, %v327_v12 }
  0xd6   : > { %v333_v13 = vpop.permute.xlu0 %332  ;;  %v343_v14 = vpop.permute.xlu1 %342 }
  0xd7   : > { %v411_v39 = vsel %vm408_vm2, %v406_v34, %v343_v14  ;;  %v407_v47 = vsel %vm403_vm1, %v402_v43, %v333_v13 }
  0xda   : > { %v353_v15 = vpop.permute.xlu0 %352  ;;  %v339_v16 = vpop.permute.xlu1 %338 }
  0xdb   : > { %v415_v30 = vsel %vm413_vm3, %v410_v29, %v353_v15  ;;  %v409_v52 = vsel %vm408_vm2, %v404_v46, %v339_v16 }
  0xde   : > { %v345_v17 = vpop.permute.xlu0 %344  ;;  %v355_v18 = vpop.permute.xlu1 %354 }
  0xdf   : > { %v416_v41 = vsel %vm413_vm3, %v411_v39, %v355_v18  ;;  %v412_v53 = vsel %vm408_vm2, %v407_v47, %v345_v17 }
  0xe2   : > { %v365_v19 = vpop.permute.xlu0 %364  ;;  %v351_v20 = vpop.permute.xlu1 %350 }
  0xe3   : > { %v420_v32 = vsel %vm418_vm4, %v415_v30, %v365_v19  ;;  %v414_v55 = vsel %vm413_vm3, %v409_v52, %v351_v20 }
  0xe6   : > { %v357_v21 = vpop.permute.xlu0 %356  ;;  %v367_v22 = vpop.permute.xlu1 %366 }
  0xe7   : > { %v421_v44 = vsel %vm418_vm4, %v416_v41, %v367_v22  ;;  %v417_v56 = vsel %vm413_vm3, %v412_v53, %v357_v21 }
  0xea   : > { %v377_v23 = vpop.permute.xlu0 %376  ;;  %v363_v24 = vpop.permute.xlu1 %362 }
  0xeb   : > { %v425_v35 = vsel %vm423_vm5, %v420_v32, %v377_v23  ;;  %v419_v59 = vsel %vm418_vm4, %v414_v55, %v363_v24 }
  0xee   : > { %v369_v27 = vpop.permute.xlu0 %368  ;;  %v379_v28 = vpop.permute.xlu1 %378 }
  0xef   : > { %v426_v48 = vsel %vm423_vm5, %v421_v44, %v379_v28  ;;  %v422_v60 = vsel %vm418_vm4, %v417_v56, %v369_v27 }
  0xf2   : > { %v389_v36 = vpop.permute.xlu0 %388  ;;  %v375_v37 = vpop.permute.xlu1 %374 }
  0xf3   : > { %v430_v40 = vsel %vm428_vm6, %v425_v35, %v389_v36  ;;  %v424_v0 = vsel %vm423_vm5, %v419_v59, %v375_v37 }
  0xf4   : > { %v438_v42 = vmul.f32 %v1739_v33, %v430_v40 }
  0xf6   : > { %v447_v49 = vrot.slane %v438_v42, 4  ;;  %v381_v50 = vpop.permute.xlu0 %380  ;;  %v391_v51 = vpop.permute.xlu1 %390 }
  0xf7   : > { %v431_v54 = vsel %vm428_vm6, %v426_v48, %v391_v51  ;;  %v427_v1 = vsel %vm423_vm5, %v422_v60, %v381_v50 }
  0xf8   : > { %v448_v57 = vadd.f32 %v447_v49, %v438_v42  ;;  %v439_v58 = vmul.f32 %v1753_v45, %v431_v54 }
  0xfa   : > { %v449_v63 = vrot.slane %v448_v57, 2  ;;  %v453_v2 = vrot.slane %v439_v58, 4  ;;  %v387_v3 = vpop.permute.xlu0 %386  ;;  %v393_v5 = vpop.permute.xlu1 %392 }
  0xfb   : > { %v429_v6 = vsel %vm428_vm6, %v424_v0, %v387_v3  ;;  %v432_v7 = vsel %vm428_vm6, %v427_v1, %v393_v5  ;;  %v1451_v5 = vmov 1983009808  }
  0xfc   : > { %v450_v8 = vadd.f32 %v449_v63, %v448_v57  ;;  %v454_v9 = vadd.f32 %v453_v2, %v439_v58  ;;  %v437_v10 = vmul.f32 %v1767_v61, %v429_v6  ;;  %v440_v11 = vmul.f32 %v1770_v62, %v432_v7 }
  0xfd   : > { %v587_v6 = vunpack.c.l.s4 %v1451_v5 }
  0xfe   : > { %v451_v12 = vrot.slane %v450_v8, 1  ;;  %v455_v13 = vrot.slane %v454_v9, 2  ;;  %v441_v14 = vrot.slane %v437_v10, 4  ;;  %v459_v15 = vrot.slane %v440_v11, 4 }
 0x100   : > { %v452_v16 = vadd.f32 %v451_v12, %v450_v8  ;;  %v456_v17 = vadd.f32 %v455_v13, %v454_v9  ;;  %v442_v18 = vadd.f32 %v441_v14, %v437_v10  ;;  %v460_v19 = vadd.f32 %v459_v15, %v440_v11 }
 0x101   : > { %v589_v11 = vlaneseq }
 0x102   : > { %v457_v20 = vrot.slane %v456_v17, 1  ;;  %v443_v21 = vrot.slane %v442_v18, 2  ;;  %v461_v22 = vrot.slane %v460_v19, 2  ;;  %472 = vrot.lane.b32.xlu0 %v452_v16, %s1449_s22  ;;  %480 = vrot.lane.b32.xlu1 %v452_v16, %s1448_s6  ;;  %v526_v30 = vrot.slane %v452_v16, 7 }
 0x104   : > { %v444_v23 = vadd.f32 %v443_v21, %v442_v18  ;;  %v462_v24 = vadd.f32 %v461_v22, %v460_v19  ;;  %v458_v25 = vadd.f32 %v457_v20, %v456_v17 }
 0x106   : > { %v445_v26 = vrot.slane %v444_v23, 1  ;;  %v463_v27 = vrot.slane %v462_v24, 1  ;;  %488 = vrot.lane.b32.xlu0 %v452_v16, %s1447_s10  ;;  %496 = vrot.lane.b32.xlu1 %v452_v16, %s1446_s24  ;;  %v529_v31 = vrot.slane %v458_v25, 6 }
 0x108   : > { %v446_v28 = vadd.f32 %v445_v26, %v444_v23  ;;  %v464_v29 = vadd.f32 %v463_v27, %v462_v24  ;;  %v588_v23 = vunpack.c.0.s8 %v587_v6  ;;  %v590_v24 = vshrl.u32 %v589_v11, 7 }
 0x10a   : > { %504 = vrot.lane.b32.xlu0 %v452_v16, %s1445_s27  ;;  %512 = vrot.lane.b32.xlu1 %v452_v16, %s1443_s9  ;;  %v947_v32 = vsel %vm527_vm7, %v452_v16, %v446_v28  ;;  %v528_v34 = vsel %vm527_vm7, %v526_v30, %v446_v28  ;;  %v532_v35 = vrot.slane %v464_v29, 5 }
 0x10b   : > { %v948_v36 = vsel %vm530_vm8, %v458_v25, %v947_v32  ;;  %v531_v37 = vsel %vm530_vm8, %v529_v31, %v528_v34 }
 0x10c   : > { %v949_v38 = vsel %vm533_vm9, %v464_v29, %v948_v36  ;;  %v1790_v39 = vsel %vm533_vm9, %v532_v35, %v531_v37 }
 0x10d   : > { %1205 = vmatpush3.msk.msra.mxu1 %vm842_vm10, %v949_v38 }
 0x10e   : > { %520 = vrot.lane.b32.xlu0 %v452_v16, %s1444_s11  ;;  %474 = vrot.lane.b32.xlu1 %v458_v25, %s1449_s22 }
 0x112   : > { %482 = vrot.lane.b32.xlu0 %v458_v25, %s1448_s6  ;;  %490 = vrot.lane.b32.xlu1 %v458_v25, %s1447_s10 }
 0x116   : > { %498 = vrot.lane.b32.xlu0 %v458_v25, %s1446_s24  ;;  %506 = vrot.lane.b32.xlu1 %v458_v25, %s1445_s27 }
 0x11a   : > { %514 = vrot.lane.b32.xlu0 %v458_v25, %s1443_s9  ;;  %522 = vrot.lane.b32.xlu1 %v458_v25, %s1444_s11  ;;  %v1452_v25 = vmov 1934713408  }
 0x11b   : > { %v620_v26 = vunpack.c.l.s4 %v1452_v25 }
 0x11e   : > { %470 = vrot.lane.b32.xlu0 %v446_v28, %s1449_s22  ;;  %476 = vrot.lane.b32.xlu1 %v464_v29, %s1449_s22 }
 0x122   : > { %478 = vrot.lane.b32.xlu0 %v446_v28, %s1448_s6  ;;  %484 = vrot.lane.b32.xlu1 %v464_v29, %s1448_s6 }
 0x126   : > { %486 = vrot.lane.b32.xlu0 %v446_v28, %s1447_s10  ;;  %492 = vrot.lane.b32.xlu1 %v464_v29, %s1447_s10 }
 0x12a   : > { %494 = vrot.lane.b32.xlu0 %v446_v28, %s1446_s24  ;;  %500 = vrot.lane.b32.xlu1 %v464_v29, %s1446_s24 }
 0x12e   : > { %502 = vrot.lane.b32.xlu0 %v446_v28, %s1445_s27  ;;  %508 = vrot.lane.b32.xlu1 %v464_v29, %s1445_s27 }
 0x132   : > { %510 = vrot.lane.b32.xlu0 %v446_v28, %s1443_s9  ;;  %516 = vrot.lane.b32.xlu1 %v464_v29, %s1443_s9 }
 0x136   : > { %518 = vrot.lane.b32.xlu0 %v446_v28, %s1444_s11  ;;  %524 = vrot.lane.b32.xlu1 %v464_v29, %s1444_s11 }
 0x174   : > { %v473_v40 = vpop.permute.xlu0 %472  ;;  %v481_v41 = vpop.permute.xlu1 %480 }
 0x175   : > { %v535_v0 = vrot.slane %v473_v40, 7  ;;  %v541_v1 = vrot.slane %v481_v41, 7 }
 0x178   : > { %v489_v42 = vpop.permute.xlu0 %488  ;;  %v497_v43 = vpop.permute.xlu1 %496 }
 0x179   : > { %v547_v63 = vrot.slane %v489_v42, 7  ;;  %v553_v20 = vrot.slane %v497_v43, 7 }
 0x17c   : > { %v505_v44 = vpop.permute.xlu0 %504  ;;  %v513_v46 = vpop.permute.xlu1 %512 }
 0x17d   : > { %v559_v27 = vrot.slane %v505_v44, 7  ;;  %v565_v28 = vrot.slane %v513_v46, 7 }
 0x180   : > { %v1815_v47 = vpop.permute.xlu0 %520  ;;  %v475_v48 = vpop.permute.xlu1 %474 }
 0x181   : > { %v537_v12 = vrot.slane %v475_v48, 6 }
 0x184   : > { %v483_v49 = vpop.permute.xlu0 %482  ;;  %v491_v50 = vpop.permute.xlu1 %490 }
 0x185   : > { %v549_v8 = vrot.slane %v491_v50, 6  ;;  %v543_v13 = vrot.slane %v483_v49, 6  ;;  %v571_v49 = vrot.slane %v1815_v47, 7 }
 0x188   : > { %v499_v51 = vpop.permute.xlu0 %498  ;;  %v507_v52 = vpop.permute.xlu1 %506 }
 0x189   : > { %v555_v31 = vrot.slane %v499_v51, 6  ;;  %v561_v43 = vrot.slane %v507_v52, 6 }
 0x18c   : > { %v515_v53 = vpop.permute.xlu0 %514  ;;  %v1817_v54 = vpop.permute.xlu1 %522 }
 0x18d   : > { %v567_v32 = vrot.slane %v515_v53, 6  ;;  %v573_v53 = vrot.slane %v1817_v54, 6 }
 0x190   : > { %v471_v55 = vpop.permute.xlu0 %470  ;;  %v477_v56 = vpop.permute.xlu1 %476 }
 0x191   : > { %v536_v9 = vsel %vm527_vm7, %v535_v0, %v471_v55  ;;  %v539_v15 = vrot.slane %v477_v56, 5  ;;  %v591_v55 = vsub.s32 %v588_v23, %v590_v24  ;;  %v621_v0 = vunpack.c.0.s8 %v620_v26 }
 0x192   : > { %v538_v21 = vsel %vm530_vm8, %v537_v12, %v536_v9 }
 0x193   : > { %v540_v34 = vsel %vm533_vm9, %v539_v15, %v538_v21  ;;  %v624_v6 = vsub.s32 %v621_v0, %v590_v24  ;;  %v1184_v21 = vld [vmem:[%s2014_s2 + $0x4] sm:$0xf] }
 0x194   : > { %v479_v57 = vpop.permute.xlu0 %478  ;;  %v485_v58 = vpop.permute.xlu1 %484 }
 0x195   : > { %v542_v10 = vsel %vm527_vm7, %v541_v1, %v479_v57  ;;  %v545_v16 = vrot.slane %v485_v58, 5 }
 0x196   : > { %v544_v22 = vsel %vm530_vm8, %v543_v13, %v542_v10 }
 0x197   : > { %v546_v35 = vsel %vm533_vm9, %v545_v16, %v544_v22  ;;  %v465_v22 = vld [vmem:[%s2014_s2] sm:$0xf] }
 0x198   : > { %v487_v59 = vpop.permute.xlu0 %486  ;;  %v493_v60 = vpop.permute.xlu1 %492  ;;  %v585_v56 = vcombine.low %v1790_v39, %v546_v35 }
 0x199   : > { %v548_v7 = vsel %vm527_vm7, %v547_v63, %v487_v59  ;;  %v551_v14 = vrot.slane %v493_v60, 5 }
 0x19a   : > { %v550_v17 = vsel %vm530_vm8, %v549_v8, %v548_v7  ;;  %v592_v5 = vrot.slane %v585_v56, %v591_v55 }
 0x19b   : > { %v552_v29 = vsel %vm533_vm9, %v551_v14, %v550_v17 }
 0x19c   : > { %v495_v2 = vpop.permute.xlu0 %494  ;;  %v501_v3 = vpop.permute.xlu1 %500  ;;  %v593_v44 = vcombine.low %v540_v34, %v552_v29  ;;  %v1454_v29 = vmov 0  }
 0x19d   : > { %v554_v30 = vsel %vm527_vm7, %v553_v20, %v495_v2  ;;  %v557_v38 = vrot.slane %v501_v3, 5 }
 0x19e   : > { %v556_v46 = vsel %vm530_vm8, %v555_v31, %v554_v30  ;;  %v600_v1 = vrot.slane %v593_v44, %v591_v55 }
 0x19f   : > { %v558_v52 = vsel %vm533_vm9, %v557_v38, %v556_v46 }
 0x1a0   : > { %v503_v18 = vpop.permute.xlu0 %502  ;;  %v509_v19 = vpop.permute.xlu1 %508  ;;  %v617_v7 = vcombine.low %v592_v5, %v600_v1  ;;  %v618_v12 = vcombine.high %v592_v5, %v600_v1 }
 0x1a1   : > { %v560_v40 = vsel %vm527_vm7, %v559_v27, %v503_v18  ;;  %v563_v50 = vrot.slane %v509_v19, 5  ;;  %v299_v27 = vld [vmem:[%s2015_s3] sm:$0xff] }
 0x1a2   : > { %v562_v57 = vsel %vm530_vm8, %v561_v43, %v560_v40  ;;  %v625_v13 = vrot.slane %v617_v7, %v624_v6  ;;  %v632_v18 = vrot.slane %v618_v12, %v624_v6 }
 0x1a3   : > { %v564_v3 = vsel %vm533_vm9, %v563_v50, %v562_v57 }
 0x1a4   : > { %v511_v36 = vpop.permute.xlu0 %510  ;;  %v517_v37 = vpop.permute.xlu1 %516 }
 0x1a5   : > { %v566_v41 = vsel %vm527_vm7, %v565_v28, %v511_v36  ;;  %v569_v42 = vrot.slane %v517_v37, 5 }
 0x1a6   : > { %v568_v48 = vsel %vm530_vm8, %v567_v32, %v566_v41 }
 0x1a7   : > { %v570_v51 = vsel %vm533_vm9, %v569_v42, %v568_v48 }
 0x1a8   : > { %v519_v58 = vpop.permute.xlu0 %518  ;;  %v525_v59 = vpop.permute.xlu1 %524  ;;  %v601_v47 = vcombine.low %v558_v52, %v570_v51 }
 0x1a9   : > { %v572_v60 = vsel %vm527_vm7, %v571_v49, %v519_v58  ;;  %v575_v63 = vrot.slane %v525_v59, 5 }
 0x1aa   : > { %v574_v2 = vsel %vm530_vm8, %v573_v53, %v572_v60  ;;  %v608_v8 = vrot.slane %v601_v47, %v591_v55 }
 0x1ab   : > { %v576_v54 = vsel %vm533_vm9, %v575_v63, %v574_v2 }
 0x1ac   : > { %v609_v39 = vcombine.low %v564_v3, %v576_v54 }
 0x1ae   : > { %v616_v9 = vrot.slane %v609_v39, %v591_v55 }
 0x1b0   : > { %v633_v10 = vcombine.low %v608_v8, %v616_v9  ;;  %v634_v11 = vcombine.high %v608_v8, %v616_v9 }
 0x1b2   : > { %v641_v14 = vrot.slane %v633_v10, %v624_v6  ;;  %v648_v15 = vrot.slane %v634_v11, %v624_v6 }
 0x1b4   : > { %v1843_v16 = vcombine.low %v625_v13, %v641_v14  ;;  %v1845_v17 = vcombine.high %v625_v13, %v641_v14  ;;  %v1851_v19 = vcombine.low %v632_v18, %v648_v15  ;;  %v1857_v20 = vcombine.high %v632_v18, %v648_v15 }
 0x1b6   : > { %659 = vrot.lane.b32.xlu1 %v1845_v17, %s1444_s11  ;;  %657 = vrot.lane.b32.xlu0 %v1843_v16, %s1444_s11 }
 0x1ba   : > { %669 = vrot.lane.b32.xlu1 %v1843_v16, %s1443_s9  ;;  %661 = vrot.lane.b32.xlu0 %v1851_v19, %s1444_s11 }
 0x1be   : > { %663 = vrot.lane.b32.xlu1 %v1857_v20, %s1444_s11  ;;  %671 = vrot.lane.b32.xlu0 %v1845_v17, %s1443_s9 }
 0x1c2   : > { %681 = vrot.lane.b32.xlu1 %v1843_v16, %s1445_s27  ;;  %673 = vrot.lane.b32.xlu0 %v1851_v19, %s1443_s9 }
 0x1c6   : > { %675 = vrot.lane.b32.xlu1 %v1857_v20, %s1443_s9  ;;  %683 = vrot.lane.b32.xlu0 %v1845_v17, %s1445_s27  ;;  %s288_s9 = scalar_lea.vmem [#allocation8], %s1183_s5 }
 0x1c7   : > { %s1047_s11 = sshll.u32 %s288_s9, 4  ;;  %s1965_s11 = int_to_ptr.vmem [resolvable:$true] %s1047_s11 }
 0x1c8   : > { %p1358_p7 = scmp.lt.s32.totalorder %s1965_s11, %s1356_s7 }
 0x1ca   : > { %693 = vrot.lane.b32.xlu1 %v1843_v16, %s1446_s24  ;;  %685 = vrot.lane.b32.xlu0 %v1851_v19, %s1445_s27 }
 0x1ce   : > { %687 = vrot.lane.b32.xlu1 %v1857_v20, %s1445_s27  ;;  %695 = vrot.lane.b32.xlu0 %v1845_v17, %s1446_s24 }
 0x1d2   : > { %705 = vrot.lane.b32.xlu1 %v1843_v16, %s1447_s10  ;;  %697 = vrot.lane.b32.xlu0 %v1851_v19, %s1446_s24 }
 0x1d6   : > { %699 = vrot.lane.b32.xlu1 %v1857_v20, %s1446_s24  ;;  %707 = vrot.lane.b32.xlu0 %v1845_v17, %s1447_s10 }
 0x1da   : > { %717 = vrot.lane.b32.xlu1 %v1843_v16, %s1448_s6  ;;  %709 = vrot.lane.b32.xlu0 %v1851_v19, %s1447_s10 }
 0x1de   : > { %711 = vrot.lane.b32.xlu1 %v1857_v20, %s1447_s10  ;;  %719 = vrot.lane.b32.xlu0 %v1845_v17, %s1448_s6  ;;  %s1963_s10 = scalar_lea.hbm %s2016_s4, %s1190_s25 }
 0x1e2   : > { %729 = vrot.lane.b32.xlu1 %v1843_v16, %s1449_s22  ;;  %721 = vrot.lane.b32.xlu0 %v1851_v19, %s1448_s6 }
 0x1e6   : > { %723 = vrot.lane.b32.xlu1 %v1857_v20, %s1448_s6  ;;  %731 = vrot.lane.b32.xlu0 %v1845_v17, %s1449_s22  ;;  %s1034_s6 = scalar_lea.sflag [#allocation5], %s1649_s14 }
 0x1ea   : > { %735 = vrot.lane.b32.xlu1 %v1857_v20, %s1449_s22  ;;  %733 = vrot.lane.b32.xlu0 %v1851_v19, %s1449_s22  ;;  %s1351_s22 = scalar_lea.vmem %s1965_s11, 128 }
 0x1eb   : > { %p1352_p0 = scmp.ne.s32.totalorder %s1965_s11, %s1351_s22  ;;  %p1359_p10 = scmp.lt.s32.totalorder %s1357_s21, %s1351_s22 }
 0x1ed   : > { %p1353_p12 = pnand %p1352_p0, %p2029_p3  ;;  %p1360_p9 = por %p1359_p10, %p1358_p7 }
 0x1ef   : > { %p1354_p13 = pneg %p1353_p12 }
 0x1f1   : > { %p1361_p11 = pnand %p1360_p9, %p1354_p13 }
 0x208   : > { %799 = vxpose.xlu0.b32.start.end [1/1] (short) (narrow) %v1184_v21, 8 }
 0x213   : > { %915 = vxpose.xlu1.b32.start.end [1/1] (short) (narrow) %v465_v22, 8 }
 0x228   : > { %v660_v23 = vpop.permute.xlu1 %659  ;;  %v658_v24 = vpop.permute.xlu0 %657 }
 0x229   : > { %v741_v48 = vsel %vm398_vm0, %v1843_v16, %v658_v24  ;;  %v742_v56 = vsel %vm398_vm0, %v1845_v17, %v660_v23 }
 0x22c   : > { %v670_v25 = vpop.permute.xlu1 %669  ;;  %v662_v26 = vpop.permute.xlu0 %661 }
 0x22d   : > { %v745_v49 = vsel %vm403_vm1, %v741_v48, %v670_v25  ;;  %v743_v2 = vsel %vm398_vm0, %v1851_v19, %v662_v26 }
 0x230   : > { %v664_v28 = vpop.permute.xlu1 %663  ;;  %v672_v4 = vpop.permute.xlu0 %671 }
 0x231   : > { %1290 = vset.pattern.permute.xlu0 %v1454_v29  ;;  %v746_v58 = vsel %vm403_vm1, %v742_v56, %v672_v4  ;;  %v744_v3 = vsel %vm398_vm0, %v1857_v20, %v664_v28 }
 0x232   : > { %302 = vperm.xlu0 %1290, %v299_v27  }
 0x234   : > { %v682_v30 = vpop.permute.xlu1 %681  ;;  %v674_v31 = vpop.permute.xlu0 %673 }
 0x235   : > { %v749_v53 = vsel %vm408_vm2, %v745_v49, %v682_v30  ;;  %v747_v5 = vsel %vm403_vm1, %v743_v2, %v674_v31 }
 0x238   : > { %v676_v32 = vpop.permute.xlu1 %675  ;;  %v684_v34 = vpop.permute.xlu0 %683 }
 0x239   : > { %v750_v63 = vsel %vm408_vm2, %v746_v58, %v684_v34  ;;  %v748_v39 = vsel %vm403_vm1, %v744_v3, %v676_v32 }
 0x23c   : > { %v694_v35 = vpop.permute.xlu1 %693  ;;  %v686_v36 = vpop.permute.xlu0 %685 }
 0x23d   : > { %v753_v55 = vsel %vm413_vm3, %v749_v53, %v694_v35  ;;  %v751_v10 = vsel %vm408_vm2, %v747_v5, %v686_v36 }
 0x240   : > { %v688_v37 = vpop.permute.xlu1 %687  ;;  %v696_v38 = vpop.permute.xlu0 %695 }
 0x241   : > { %v754_v1 = vsel %vm413_vm3, %v750_v63, %v696_v38 }
 0x244   : > { %v706_v40 = vpop.permute.xlu1 %705  ;;  %v698_v41 = vpop.permute.xlu0 %697 }
 0x245   : > { %v757_v57 = vsel %vm418_vm4, %v753_v55, %v706_v40  ;;  %v755_v12 = vsel %vm413_vm3, %v751_v10, %v698_v41 }
 0x248   : > { %v700_v42 = vpop.permute.xlu1 %699  ;;  %v708_v43 = vpop.permute.xlu0 %707 }
 0x249   : > { %v758_v54 = vsel %vm418_vm4, %v754_v1, %v708_v43 }
 0x24c   : > { %v718_v44 = vpop.permute.xlu1 %717  ;;  %v710_v46 = vpop.permute.xlu0 %709 }
 0x24d   : > { %v761_v59 = vsel %vm423_vm5, %v757_v57, %v718_v44  ;;  %v759_v16 = vsel %vm418_vm4, %v755_v12, %v710_v46 }
 0x250   : > { %v712_v50 = vpop.permute.xlu1 %711  ;;  %v720_v51 = vpop.permute.xlu0 %719 }
 0x251   : > { %v762_v6 = vsel %vm423_vm5, %v758_v54, %v720_v51 }
 0x254   : > { %v730_v52 = vpop.permute.xlu1 %729  ;;  %v722_v60 = vpop.permute.xlu0 %721 }
 0x255   : > { %v765_v0 = vsel %vm428_vm6, %v761_v59, %v730_v52  ;;  %v763_v18 = vsel %vm423_vm5, %v759_v16, %v722_v60 }
 0x256   : > { %v769_v47 = vmul.f32 %v765_v0, %v1767_v61  ;;  %v752_v61 = vsel %vm408_vm2, %v748_v39, %v688_v37 }
 0x257   : > { %v756_v13 = vsel %vm413_vm3, %v752_v61, %v700_v42 }
 0x258   : > { %v773_v7 = vrot.slane %v769_v47, 4  ;;  %v724_v8 = vpop.permute.xlu1 %723  ;;  %v732_v9 = vpop.permute.xlu0 %731  ;;  %v760_v17 = vsel %vm418_vm4, %v756_v13, %v712_v50 }
 0x259   : > { %v766_v11 = vsel %vm428_vm6, %v762_v6, %v732_v9  ;;  %v764_v19 = vsel %vm423_vm5, %v760_v17, %v724_v8 }
 0x25a   : > { %v774_v14 = vadd.f32 %v773_v7, %v769_v47  ;;  %v770_v15 = vmul.f32 %v766_v11, %v1739_v33 }
 0x25c   : > { %v779_v20 = vrot.slane %v770_v15, 4  ;;  %v736_v21 = vpop.permute.xlu1 %735  ;;  %v734_v22 = vpop.permute.xlu0 %733  ;;  %v775_v23 = vrot.slane %v774_v14, 2 }
 0x25d   : > { %v768_v24 = vsel %vm428_vm6, %v764_v19, %v736_v21  ;;  %v767_v25 = vsel %vm428_vm6, %v763_v18, %v734_v22 }
 0x25e   : > { %v780_v26 = vadd.f32 %v779_v20, %v770_v15  ;;  %v772_v27 = vmul.f32 %v768_v24, %v1770_v62  ;;  %v771_v33 = vmul.f32 %v767_v25, %v1753_v45  ;;  %v776_v30 = vadd.f32 %v775_v23, %v774_v14 }
 0x260   : > { %v781_v28 = vrot.slane %v780_v26, 2  ;;  %v791_v4 = vrot.slane %v772_v27, 4  ;;  %v785_v29 = vrot.slane %v771_v33, 4  ;;  %v777_v38 = vrot.slane %v776_v30, 1 }
 0x262   : > { %v782_v31 = vadd.f32 %v781_v28, %v780_v26  ;;  %v792_v32 = vadd.f32 %v791_v4, %v772_v27  ;;  %v786_v34 = vadd.f32 %v785_v29, %v771_v33  ;;  %v778_v62 = vadd.f32 %v777_v38, %v776_v30 }
 0x264   : > { %v783_v35 = vrot.slane %v782_v31, 1  ;;  %v793_v36 = vrot.slane %v792_v32, 2  ;;  %v787_v37 = vrot.slane %v786_v34, 2 }
 0x266   : > { %v794_v40 = vadd.f32 %v793_v36, %v792_v32  ;;  %v788_v41 = vadd.f32 %v787_v37, %v786_v34  ;;  %v784_v42 = vadd.f32 %v783_v35, %v782_v31 }
 0x268   : > { %v789_v43 = vrot.slane %v788_v41, 1  ;;  %v795_v44 = vrot.slane %v794_v40, 1  ;;  %v835_v48 = vsel %vm527_vm7, %v784_v42, %v778_v62 }
 0x26a   : > { %v790_v46 = vadd.f32 %v789_v43, %v788_v41  ;;  %v796_v45 = vadd.f32 %v795_v44, %v794_v40 }
 0x26c   : > { %v836_v49 = vsel %vm530_vm8, %v790_v46, %v835_v48 }
 0x26d   : > { %v837_v50 = vsel %vm533_vm9, %v796_v45, %v836_v49 }
 0x26e   : > { %1200 = vmatpush3.msk.msra.mxu0 %vm842_vm10, %v837_v50 }
 0x288   : > { %v815_v51 = vpop.trf.xlu0 }
 0x289   : > { %1202 = vmatmul.mubr.msk.f32.vlgmr.msra.gmra.mrb[0].mxu0 %vm838_vm12, %v815_v51 }
 0x293   : > { %v931_v53 = vpop.trf.xlu1 }
 0x294   : > { %1207 = vmatmul.mubr.msk.f32.vlgmr.msra.gmra.mrb[0].mxu1 %vm838_vm12, %v931_v53 }
 0x2b1   : > { %v303_v58 = vpop.permute.xlu0 %302 }
 0x35c   : > { %v911_v55 = vpop.f32.mrb[0].mxu0 }
 0x35d   : > { %v1203_v56 = vpop.f32.mrb[1].mxu0 }
 0x367   : > { %v1021_v57 = vpop.f32.mrb[0].mxu1 }
 0x368   : > { %v1022_v59 = vadd.f32 %v1021_v57, %v911_v55  ;;  %v1208_v52 = vpop.f32.mrb[1].mxu1 }
 0x36a   : > { %v1026_v60 = vadd.f32 %v1022_v59, %v303_v58 }
 0x36c   : > { %1032 = vst [vmem:[%s288_s9] sm:$0xff] %v1026_v60 }
 0x36d   : > { %1364 = shalt.err (!%p1361_p11)
}
 0x36e   : > { %s1365_s14 = scalar_lea.hbm %s1963_s10, 128  ;;  %s1369_s8 = scalar_lea.hbm %s2016_s4, 256 }
 0x36f   : > { %p1366_p1 = scmp.ne.s32.totalorder %s1963_s10, %s1365_s14  ;;  %p1370_p5 = scmp.lt.u32.totalorder %s1963_s10, %s2016_s4 }
 0x370   : > { %p1371_p4 = scmp.lt.u32.totalorder %s1369_s8, %s1365_s14  ;;  %p1373_p0 = scmp.lt.u32.totalorder %s1365_s14, %s1963_s10 }
 0x371   : > { %p1367_p6 = pnand %p1366_p1, %p2029_p3 }
 0x372   : > { %p1372_p8 = por %p1371_p4, %p1370_p5 }
 0x373   : > { %p1368_p2 = pneg %p1367_p6 }
 0x374   : > { %p1374_p12 = por %p1373_p0, %p1372_p8 }
 0x376   : > { %p1375_p13 = pnand %p1374_p12, %p1368_p2 }
 0x378   : > { %1378 = shalt.err (!%p1375_p13)
}
 0x379   : > { %1213 = dma.vmem_to_hbm [thread:$0]  (%p2029_p3), %s1965_s11, 128, %s1963_s10, %s1034_s6  }
 0x37a PF: > { %s1059_s25 = sand.u32 1, %s1417_s15   ;;  %p2030_p7 = scmp.ne.s32.totalorder %s2023_s30, 0 }
 0x37b   : > { %p2031_p10 = scmp.ge.s32.totalorder %s1437_s20, 2  ;;  %s1060_s9 = scalar_lea.sflag [#allocation5], %s1059_s25 }
 0x37d   : > { %p1223_p9 = pnand %p2031_p10, %p2030_p7 }
 0x37f   : > { %1412 = dma.done.wait (!%p1223_p9), %s1060_s9, 128  }
 0x380   : > { %1414 = vsyncadd (!%p1223_p9), %s1060_s9, 4294967168  ;;  %s23_s20 = sadd.s32 1, %s1437_s20   ;;  %s2032_s15 = smov %s1421_s16 }
 0x381   : > { %p20_p11 = scmp.ge.s32.totalorder %s23_s20, 4   ;;  %s2033_s16 = smov %s1425_s17 }
 0x382   : > { %s2034_s17 = smov %s1537_s29  ;;  %s2035_s18 = smov %s1433_s19 }
 0x383   : > { %s2036_s19 = smov %s2038_s23  ;;  %22 = sbr.rel (!%p20_p11) target bundleno = 8 (0x8), region = 106 }
 0x38a   :  { %1065 = vsyncpa [#allocation4], 1 }
 0x38b   :  { %1067 = vsyncpa [#allocation4 + $0x1], 1 }
 0x38c   :  { %1068 = vsyncpa [#allocation7], 1 }
 0x38d   :  { %1070 = vsyncpa [#allocation7 + $0x1], 1 }
 0x38e   :  { %1071 = vsyncpa [#allocation5], 1 }
 0x38f   :  { %1073 = vsyncpa [#allocation5 + $0x1], 1 }

</bundles_post_ra>
